<compile_context>
chip_gen: v5e
topology: v5e:2x2
jax: 0.10.0
libtpu: 0.0.40
codegen_flags: <defaults>
</compile_context>

<pallas_src>
import functools

import jax
import jax.numpy as jnp
from jax.experimental import pallas as pl
from jax.experimental.pallas import tpu as pltpu


# ------------------------------ Pallas kernel ------------------------------ #
def _setnet_kernel(x_ref, mask_ref, pool_ref,
                   w1_ref, b1_ref, w2_ref, b2_ref,
                   w3_ref, b3_ref, w4_ref, b4_ref,
                   beta_ref, bias_ref,
                   out_ref, *, reduction):
    # x_ref:    (D_IN, L) bf16   -- L = TB*M element rows of this batch tile
    # mask_ref: (1, L)    f32
    # pool_ref: (L, TB)   f32    -- constant element->set membership (VMEM resident)
    # out_ref:  (1, 1, TB) f32   -- one scalar per sample, lane-dense
    x = x_ref[...]

    # feature_extractor: per-element MLP, bf16 MXU operands, f32 accumulation.
    h = jnp.dot(w1_ref[...], x, preferred_element_type=jnp.float32) + b1_ref[...]
    h = jnp.maximum(h, 0.0).astype(jnp.bfloat16)                     # (7, L)
    h = jnp.dot(w2_ref[...], h, preferred_element_type=jnp.float32) + b2_ref[...]
    h = jnp.maximum(h, 0.0).astype(jnp.bfloat16)                     # (6, L)
    # TODO(synk): nn.Dropout(p=0.7) is treated as inference-mode identity here;
    # training-mode stochastic dropout (pltpu.prng_*) is not implemented.
    h = jnp.dot(w3_ref[...], h, preferred_element_type=jnp.float32) + b3_ref[...]
    h = jnp.maximum(h, 0.0).astype(jnp.bfloat16)                     # (5, L)
    feats = jnp.dot(w4_ref[...], h, preferred_element_type=jnp.float32) + b4_ref[...]
    feats = jnp.maximum(feats, 0.0)                                  # (3, L) f32

    # InvLinear: project with beta first (reassociated), mask, then segment-sum
    # the M elements of each set via the constant pooling matrix.
    z = jnp.sum(feats * beta_ref[...], axis=0, keepdims=True)        # (1, L)
    z = z * mask_ref[...]                                            # (1, L)
    y = jnp.dot(z, pool_ref[...], preferred_element_type=jnp.float32)  # (1, TB)

    if reduction == "mean":
        sizes = jnp.dot(mask_ref[...], pool_ref[...],
                        preferred_element_type=jnp.float32)          # (1, TB)
        # Guard empty / padded sets (sizes == 0) against inf/NaN.
        y = y * pl.reciprocal(jnp.maximum(sizes, 1.0), approx=True)

    out_ref[0] = y + bias_ref[...]


# --------------------------------- wrapper ---------------------------------- #
def setnet_forward(x, mask, params, *, reduction="sum", tb=128):
    """SetNet forward.  x: (N, M, D) f32, mask: (N, M) or None -> (N, 1) f32."""
    N, M, D = x.shape
    assert tb % 128 == 0, "tb must be a multiple of 128 (lane-dense output)"
    if mask is None:
        mask = jnp.ones((N, M), jnp.float32)
    mask = mask.astype(jnp.float32)

    G = -(-N // tb)            # number of batch tiles == grid steps
    n_pad = G * tb
    L = tb * M                 # element rows per tile

    if n_pad != N:
        x = jnp.pad(x, ((0, n_pad - N), (0, 0), (0, 0)))
        mask = jnp.pad(mask, ((0, n_pad - N), (0, 0)))

    # Lane-dense transposed layouts: features on sublanes, elements on lanes.
    x_t = x.reshape(n_pad * M, D).T.astype(jnp.bfloat16)             # (D, n_pad*M)
    mask_row = mask.reshape(1, n_pad * M)                            # (1, n_pad*M)

    # Constant element -> (tile-local) set pooling matrix.
    r = jnp.arange(L, dtype=jnp.int32)[:, None]
    c = jnp.arange(tb, dtype=jnp.int32)[None, :]
    pool = (r // M == c).astype(jnp.float32)                         # (L, tb)

    w1t = params["w1"].T.astype(jnp.bfloat16); b1c = params["b1"].reshape(-1, 1)
    w2t = params["w2"].T.astype(jnp.bfloat16); b2c = params["b2"].reshape(-1, 1)
    w3t = params["w3"].T.astype(jnp.bfloat16); b3c = params["b3"].reshape(-1, 1)
    w4t = params["w4"].T.astype(jnp.bfloat16); b4c = params["b4"].reshape(-1, 1)
    beta = params["beta"].astype(jnp.float32)                        # (OUT_F, 1)
    bias = params["bias"].reshape(1, 1).astype(jnp.float32)          # (1, 1)

    def full(shape):
        nd = len(shape)
        return pl.BlockSpec(shape, lambda g, _nd=nd: (0,) * _nd)

    out = pl.pallas_call(
        functools.partial(_setnet_kernel, reduction=reduction),
        out_shape=jax.ShapeDtypeStruct((G, 1, tb), jnp.float32),
        grid=(G,),
        in_specs=[
            pl.BlockSpec((D, L), lambda g: (0, g)),        # x (transposed, bf16)
            pl.BlockSpec((1, L), lambda g: (0, g)),        # mask row
            full(pool.shape),                              # pooling matrix (resident)
            full(w1t.shape), full(b1c.shape),
            full(w2t.shape), full(b2c.shape),
            full(w3t.shape), full(b3c.shape),
            full(w4t.shape), full(b4c.shape),
            full(beta.shape), full(bias.shape),
        ],
        out_specs=pl.BlockSpec((1, 1, tb), lambda g: (g, 0, 0)),
        compiler_params=pltpu.CompilerParams(
            dimension_semantics=("parallel",)),
    )(x_t, mask_row, pool, w1t, b1c, w2t, b2c, w3t, b3c, w4t, b4c, beta, bias)

    return out.reshape(G * tb)[:N].reshape(N, 1)


# ----------------------------- pure-JAX reference ---------------------------- #
def setnet_ref(x, mask, params, reduction="sum"):
    h = jax.nn.relu(x @ params["w1"] + params["b1"])
    h = jax.nn.relu(h @ params["w2"] + params["b2"])
    h = jax.nn.relu(h @ params["w3"] + params["b3"])
    feats = jax.nn.relu(h @ params["w4"] + params["b4"])             # (N, M, 3)
    pooled = (feats * mask[..., None]).sum(axis=1)                   # (N, 3)
    y = pooled @ params["beta"]                                      # (N, 1)
    if reduction == "mean":
        sizes = jnp.maximum(mask.sum(axis=1, keepdims=True), 1.0)
        y = y / sizes
    return y + params["bias"].reshape(1, 1)


# ----------------------------------- main ------------------------------------ #
if __name__ == "__main__":
    D_IN, H1, H2, H3, OUT_F = 5, 7, 6, 5, 3   # module defaults: n_features=5, n_output=3
    N, M = 4, 8                               # 4 sets, up to 8 (padded) elements each

    key = jax.random.PRNGKey(0)
    ks = jax.random.split(key, 16)
    params = {
        "w1": 0.3 * jax.random.normal(ks[0], (D_IN, H1), jnp.float32),
        "b1": 0.1 * jax.random.normal(ks[1], (H1,), jnp.float32),
        "w2": 0.3 * jax.random.normal(ks[2], (H1, H2), jnp.float32),
        "b2": 0.1 * jax.random.normal(ks[3], (H2,), jnp.float32),
        "w3": 0.3 * jax.random.normal(ks[4], (H2, H3), jnp.float32),
        "b3": 0.1 * jax.random.normal(ks[5], (H3,), jnp.float32),
        "w4": 0.3 * jax.random.normal(ks[6], (H3, OUT_F), jnp.float32),
        "b4": 0.1 * jax.random.normal(ks[7], (OUT_F,), jnp.float32),
        "beta": 0.3 * jax.random.normal(ks[8], (OUT_F, 1), jnp.float32),
        "bias": 0.1 * jax.random.normal(ks[9], (1, 1), jnp.float32),
    }

    x = jax.random.normal(ks[10], (N, M, D_IN), jnp.float32)
    lengths = jnp.array([8, 5, 3, 1], jnp.int32)                     # valid elements per set
    mask = (jnp.arange(M)[None, :] < lengths[:, None]).astype(jnp.float32)

    # reduction='sum' (module default)
    out = jax.block_until_ready(setnet_forward(x, mask, params, reduction="sum"))
    ref = setnet_ref(x, mask, params, reduction="sum")
    assert out.shape == (N, 1), out.shape
    assert jnp.allclose(out, ref, atol=2e-2, rtol=2e-2), (out, ref)   # bf16 MXU operands

    # reduction='mean' (InvLinear also supports it)
    out_m = jax.block_until_ready(setnet_forward(x, mask, params, reduction="mean"))
    ref_m = setnet_ref(x, mask, params, reduction="mean")
    assert jnp.allclose(out_m, ref_m, atol=2e-2, rtol=2e-2), (out_m, ref_m)

    # Multi-tile grid (G > 1 batch tiles; exercises the parallel grid axis).
    N2 = 300
    x2 = jax.random.normal(ks[11], (N2, M, D_IN), jnp.float32)
    len2 = jax.random.randint(ks[12], (N2,), 1, M + 1)
    mask2 = (jnp.arange(M)[None, :] < len2[:, None]).astype(jnp.float32)
    out2 = jax.block_until_ready(setnet_forward(x2, mask2, params, reduction="sum"))
    ref2 = setnet_ref(x2, mask2, params, reduction="sum")
    assert out2.shape == (N2, 1), out2.shape
    assert jnp.allclose(out2, ref2, atol=2e-2, rtol=2e-2), \
        float(jnp.max(jnp.abs(out2 - ref2)))

    print("KERNEL_OK")
</pallas_src>

<mosaic_0001>
module attributes {stable_mosaic.version = 11 : i64} {
  func.func @_setnet_kernel(%arg0: i32, %arg1: memref<5x1024xbf16, #tpu.memory_space<vmem>>, %arg2: memref<1x1024xf32, #tpu.memory_space<vmem>>, %arg3: memref<1024x128xf32, #tpu.memory_space<vmem>>, %arg4: memref<7x5xbf16, #tpu.memory_space<vmem>>, %arg5: memref<7x1xf32, #tpu.memory_space<vmem>>, %arg6: memref<6x7xbf16, #tpu.memory_space<vmem>>, %arg7: memref<6x1xf32, #tpu.memory_space<vmem>>, %arg8: memref<5x6xbf16, #tpu.memory_space<vmem>>, %arg9: memref<5x1xf32, #tpu.memory_space<vmem>>, %arg10: memref<3x5xbf16, #tpu.memory_space<vmem>>, %arg11: memref<3x1xf32, #tpu.memory_space<vmem>>, %arg12: memref<3x1xf32, #tpu.memory_space<vmem>>, %arg13: memref<1x1xf32, #tpu.memory_space<vmem>>, %arg14: memref<1x1x128xf32, #tpu.memory_space<vmem>>) attributes {dimension_semantics = [#tpu.dimension_semantics<parallel>], iteration_bounds = array<i64: 1>, scalar_prefetch = 0 : i64, scratch_operands = 0 : i64, tpu.core_type = #tpu.core_type<tc>, window_params = [{transform_indices = @transform_0, window_bounds = array<i64: 5, 1024>}, {transform_indices = @transform_1, window_bounds = array<i64: 1, 1024>}, {pipeline_mode = #tpu.pipeline_mode<synchronous>, transform_indices = @transform_2, window_bounds = array<i64: 1024, 128>}, {pipeline_mode = #tpu.pipeline_mode<synchronous>, transform_indices = @transform_3, window_bounds = array<i64: 7, 5>}, {pipeline_mode = #tpu.pipeline_mode<synchronous>, transform_indices = @transform_4, window_bounds = array<i64: 7, 1>}, {pipeline_mode = #tpu.pipeline_mode<synchronous>, transform_indices = @transform_5, window_bounds = array<i64: 6, 7>}, {pipeline_mode = #tpu.pipeline_mode<synchronous>, transform_indices = @transform_6, window_bounds = array<i64: 6, 1>}, {pipeline_mode = #tpu.pipeline_mode<synchronous>, transform_indices = @transform_7, window_bounds = array<i64: 5, 6>}, {pipeline_mode = #tpu.pipeline_mode<synchronous>, transform_indices = @transform_8, window_bounds = array<i64: 5, 1>}, {pipeline_mode = #tpu.pipeline_mode<synchronous>, transform_indices = @transform_9, window_bounds = array<i64: 3, 5>}, {pipeline_mode = #tpu.pipeline_mode<synchronous>, transform_indices = @transform_10, window_bounds = array<i64: 3, 1>}, {pipeline_mode = #tpu.pipeline_mode<synchronous>, transform_indices = @transform_11, window_bounds = array<i64: 3, 1>}, {pipeline_mode = #tpu.pipeline_mode<synchronous>, transform_indices = @transform_12, window_bounds = array<i64: 1, 1>}, {transform_indices = @transform_13, window_bounds = array<i64: 1, 1, 128>}]} {
    %c0 = arith.constant 0 : index
    %c0_0 = arith.constant 0 : index
    %0 = vector.load %arg1[%c0, %c0_0] : memref<5x1024xbf16, #tpu.memory_space<vmem>>, vector<5x1024xbf16>
    %c0_1 = arith.constant 0 : index
    %c0_2 = arith.constant 0 : index
    %1 = vector.load %arg4[%c0_1, %c0_2] : memref<7x5xbf16, #tpu.memory_space<vmem>>, vector<7x5xbf16>
    %cst = arith.constant dense<0.000000e+00> : vector<7x1024xf32>
    %2 = tpu.matmul %1, %0, %cst {dimension_numbers = #tpu.dot_dimension_numbers<[1], [0], [0], [1], [0, 0, 1, 1], [], []>} : vector<7x5xbf16>, vector<5x1024xbf16>, vector<7x1024xf32> -> vector<7x1024xf32>
    %c0_3 = arith.constant 0 : index
    %c0_4 = arith.constant 0 : index
    %3 = vector.load %arg5[%c0_3, %c0_4] : memref<7x1xf32, #tpu.memory_space<vmem>>, vector<7x1xf32>
    %4 = vector.broadcast %3 : vector<7x1xf32> to vector<7x1024xf32>
    %5 = arith.addf %2, %4 : vector<7x1024xf32>
    %cst_5 = arith.constant 0.000000e+00 : f32
    %6 = vector.broadcast %cst_5 : f32 to vector<7x1024xf32>
    %7 = arith.maximumf %5, %6 : vector<7x1024xf32>
    %8 = arith.truncf %7 : vector<7x1024xf32> to vector<7x1024xbf16>
    %c0_6 = arith.constant 0 : index
    %c0_7 = arith.constant 0 : index
    %9 = vector.load %arg6[%c0_6, %c0_7] : memref<6x7xbf16, #tpu.memory_space<vmem>>, vector<6x7xbf16>
    %cst_8 = arith.constant dense<0.000000e+00> : vector<6x1024xf32>
    %10 = tpu.matmul %9, %8, %cst_8 {dimension_numbers = #tpu.dot_dimension_numbers<[1], [0], [0], [1], [0, 0, 1, 1], [], []>} : vector<6x7xbf16>, vector<7x1024xbf16>, vector<6x1024xf32> -> vector<6x1024xf32>
    %c0_9 = arith.constant 0 : index
    %c0_10 = arith.constant 0 : index
    %11 = vector.load %arg7[%c0_9, %c0_10] : memref<6x1xf32, #tpu.memory_space<vmem>>, vector<6x1xf32>
    %12 = vector.broadcast %11 : vector<6x1xf32> to vector<6x1024xf32>
    %13 = arith.addf %10, %12 : vector<6x1024xf32>
    %cst_11 = arith.constant 0.000000e+00 : f32
    %14 = vector.broadcast %cst_11 : f32 to vector<6x1024xf32>
    %15 = arith.maximumf %13, %14 : vector<6x1024xf32>
    %16 = arith.truncf %15 : vector<6x1024xf32> to vector<6x1024xbf16>
    %c0_12 = arith.constant 0 : index
    %c0_13 = arith.constant 0 : index
    %17 = vector.load %arg8[%c0_12, %c0_13] : memref<5x6xbf16, #tpu.memory_space<vmem>>, vector<5x6xbf16>
    %cst_14 = arith.constant dense<0.000000e+00> : vector<5x1024xf32>
    %18 = tpu.matmul %17, %16, %cst_14 {dimension_numbers = #tpu.dot_dimension_numbers<[1], [0], [0], [1], [0, 0, 1, 1], [], []>} : vector<5x6xbf16>, vector<6x1024xbf16>, vector<5x1024xf32> -> vector<5x1024xf32>
    %c0_15 = arith.constant 0 : index
    %c0_16 = arith.constant 0 : index
    %19 = vector.load %arg9[%c0_15, %c0_16] : memref<5x1xf32, #tpu.memory_space<vmem>>, vector<5x1xf32>
    %20 = vector.broadcast %19 : vector<5x1xf32> to vector<5x1024xf32>
    %21 = arith.addf %18, %20 : vector<5x1024xf32>
    %cst_17 = arith.constant 0.000000e+00 : f32
    %22 = vector.broadcast %cst_17 : f32 to vector<5x1024xf32>
    %23 = arith.maximumf %21, %22 : vector<5x1024xf32>
    %24 = arith.truncf %23 : vector<5x1024xf32> to vector<5x1024xbf16>
    %c0_18 = arith.constant 0 : index
    %c0_19 = arith.constant 0 : index
    %25 = vector.load %arg10[%c0_18, %c0_19] : memref<3x5xbf16, #tpu.memory_space<vmem>>, vector<3x5xbf16>
    %cst_20 = arith.constant dense<0.000000e+00> : vector<3x1024xf32>
    %26 = tpu.matmul %25, %24, %cst_20 {dimension_numbers = #tpu.dot_dimension_numbers<[1], [0], [0], [1], [0, 0, 1, 1], [], []>} : vector<3x5xbf16>, vector<5x1024xbf16>, vector<3x1024xf32> -> vector<3x1024xf32>
    %c0_21 = arith.constant 0 : index
    %c0_22 = arith.constant 0 : index
    %27 = vector.load %arg11[%c0_21, %c0_22] : memref<3x1xf32, #tpu.memory_space<vmem>>, vector<3x1xf32>
    %28 = vector.broadcast %27 : vector<3x1xf32> to vector<3x1024xf32>
    %29 = arith.addf %26, %28 : vector<3x1024xf32>
    %cst_23 = arith.constant 0.000000e+00 : f32
    %30 = vector.broadcast %cst_23 : f32 to vector<3x1024xf32>
    %31 = arith.maximumf %29, %30 : vector<3x1024xf32>
    %c0_24 = arith.constant 0 : index
    %c0_25 = arith.constant 0 : index
    %32 = vector.load %arg12[%c0_24, %c0_25] : memref<3x1xf32, #tpu.memory_space<vmem>>, vector<3x1xf32>
    %33 = vector.broadcast %32 : vector<3x1xf32> to vector<3x1024xf32>
    %34 = arith.mulf %31, %33 : vector<3x1024xf32>
    %cst_26 = arith.constant dense<0.000000e+00> : vector<1024xf32>
    %35 = vector.multi_reduction <add>, %34, %cst_26 [0] : vector<3x1024xf32> to vector<1024xf32>
    %36 = vector.shape_cast %35 : vector<1024xf32> to vector<1x1024xf32>
    %c0_27 = arith.constant 0 : index
    %c0_28 = arith.constant 0 : index
    %37 = vector.load %arg2[%c0_27, %c0_28] : memref<1x1024xf32, #tpu.memory_space<vmem>>, vector<1x1024xf32>
    %38 = arith.mulf %36, %37 : vector<1x1024xf32>
    %c0_29 = arith.constant 0 : index
    %c0_30 = arith.constant 0 : index
    %39 = vector.load %arg3[%c0_29, %c0_30] : memref<1024x128xf32, #tpu.memory_space<vmem>>, vector<1024x128xf32>
    %cst_31 = arith.constant dense<0.000000e+00> : vector<1x128xf32>
    %40 = tpu.matmul %38, %39, %cst_31 {dimension_numbers = #tpu.dot_dimension_numbers<[1], [0], [0], [1], [0, 0, 1, 1], [], []>} : vector<1x1024xf32>, vector<1024x128xf32>, vector<1x128xf32> -> vector<1x128xf32>
    %c0_32 = arith.constant 0 : index
    %c0_33 = arith.constant 0 : index
    %41 = vector.load %arg13[%c0_32, %c0_33] : memref<1x1xf32, #tpu.memory_space<vmem>>, vector<1x1xf32>
    %42 = vector.broadcast %41 : vector<1x1xf32> to vector<1x128xf32>
    %43 = arith.addf %40, %42 : vector<1x128xf32>
    %c0_34 = arith.constant 0 : index
    %c0_35 = arith.constant 0 : index
    %c0_36 = arith.constant 0 : index
    %44 = vector.load %arg14[%c0_34, %c0_35, %c0_36] : memref<1x1x128xf32, #tpu.memory_space<vmem>>, vector<1x1x128xf32>
    %45 = vector.shape_cast %44 : vector<1x1x128xf32> to vector<1x128xf32>
    %46 = vector.shape_cast %43 : vector<1x128xf32> to vector<1x1x128xf32>
    tpu.vector_store %arg14[%c0_34, %c0_35, %c0_36], %46 {strides = array<i32>} : memref<1x1x128xf32, #tpu.memory_space<vmem>>, vector<1x1x128xf32>,
    return
  }
  func.func @transform_0(%arg0: i32) -> (i32, i32) {
    %c0_i32 = arith.constant 0 : i32
    %c0_i32_0 = arith.constant 0 : i32
    return %c0_i32, %arg0 : i32, i32
  }
  func.func @transform_1(%arg0: i32) -> (i32, i32) {
    %c0_i32 = arith.constant 0 : i32
    %c0_i32_0 = arith.constant 0 : i32
    return %c0_i32, %arg0 : i32, i32
  }
  func.func @transform_2(%arg0: i32) -> (i32, i32) {
    %c0_i32 = arith.constant 0 : i32
    %c0_i32_0 = arith.constant 0 : i32
    %c0_i32_1 = arith.constant 0 : i32
    return %c0_i32, %c0_i32_0 : i32, i32
  }
  func.func @transform_3(%arg0: i32) -> (i32, i32) {
    %c0_i32 = arith.constant 0 : i32
    %c0_i32_0 = arith.constant 0 : i32
    %c0_i32_1 = arith.constant 0 : i32
    return %c0_i32, %c0_i32_0 : i32, i32
  }
  func.func @transform_4(%arg0: i32) -> (i32, i32) {
    %c0_i32 = arith.constant 0 : i32
    %c0_i32_0 = arith.constant 0 : i32
    %c0_i32_1 = arith.constant 0 : i32
    return %c0_i32, %c0_i32_0 : i32, i32
  }
  func.func @transform_5(%arg0: i32) -> (i32, i32) {
    %c0_i32 = arith.constant 0 : i32
    %c0_i32_0 = arith.constant 0 : i32
    %c0_i32_1 = arith.constant 0 : i32
    return %c0_i32, %c0_i32_0 : i32, i32
  }
  func.func @transform_6(%arg0: i32) -> (i32, i32) {
    %c0_i32 = arith.constant 0 : i32
    %c0_i32_0 = arith.constant 0 : i32
    %c0_i32_1 = arith.constant 0 : i32
    return %c0_i32, %c0_i32_0 : i32, i32
  }
  func.func @transform_7(%arg0: i32) -> (i32, i32) {
    %c0_i32 = arith.constant 0 : i32
    %c0_i32_0 = arith.constant 0 : i32
    %c0_i32_1 = arith.constant 0 : i32
    return %c0_i32, %c0_i32_0 : i32, i32
  }
  func.func @transform_8(%arg0: i32) -> (i32, i32) {
    %c0_i32 = arith.constant 0 : i32
    %c0_i32_0 = arith.constant 0 : i32
    %c0_i32_1 = arith.constant 0 : i32
    return %c0_i32, %c0_i32_0 : i32, i32
  }
  func.func @transform_9(%arg0: i32) -> (i32, i32) {
    %c0_i32 = arith.constant 0 : i32
    %c0_i32_0 = arith.constant 0 : i32
    %c0_i32_1 = arith.constant 0 : i32
    return %c0_i32, %c0_i32_0 : i32, i32
  }
  func.func @transform_10(%arg0: i32) -> (i32, i32) {
    %c0_i32 = arith.constant 0 : i32
    %c0_i32_0 = arith.constant 0 : i32
    %c0_i32_1 = arith.constant 0 : i32
    return %c0_i32, %c0_i32_0 : i32, i32
  }
  func.func @transform_11(%arg0: i32) -> (i32, i32) {
    %c0_i32 = arith.constant 0 : i32
    %c0_i32_0 = arith.constant 0 : i32
    %c0_i32_1 = arith.constant 0 : i32
    return %c0_i32, %c0_i32_0 : i32, i32
  }
  func.func @transform_12(%arg0: i32) -> (i32, i32) {
    %c0_i32 = arith.constant 0 : i32
    %c0_i32_0 = arith.constant 0 : i32
    %c0_i32_1 = arith.constant 0 : i32
    return %c0_i32, %c0_i32_0 : i32, i32
  }
  func.func @transform_13(%arg0: i32) -> (i32, i32, i32) {
    %c0_i32 = arith.constant 0 : i32
    %c0_i32_0 = arith.constant 0 : i32
    %c0_i32_1 = arith.constant 0 : i32
    return %arg0, %c0_i32, %c0_i32_0 : i32, i32, i32
  }
}

</mosaic_0001>

<bundles_post_ra>
// kernel: tpu_custom_call.1
= control target key start
LH: loop header
LB: loop body
LE: loop exit
PB: predicated region body
PF: predicated region fallthrough
CT: control target
= control target key end

     0   :  { %s1487_s0 = inlined_call_operand.hbm [shape: bf16[5,1024], index: 0, kind: input, shape index: {}]   ;;  %s1488_s1 = inlined_call_operand.vmem [shape: f32[1,1024], index: 1, kind: input, shape index: {}]   ;;  %s1489_s2 = inlined_call_operand.hbm [shape: f32[1024,128], index: 2, kind: input, shape index: {}]   ;;  %s1490_s3 = inlined_call_operand.vmem [shape: bf16[7,5], index: 3, kind: input, shape index: {}]   ;;  %s1491_s4 = inlined_call_operand.vmem [shape: f32[7,1], index: 4, kind: input, shape index: {}]   ;;  %s1492_s5 = inlined_call_operand.vmem [shape: bf16[6,7], index: 5, kind: input, shape index: {}]   ;;  %s1493_s6 = inlined_call_operand.vmem [shape: f32[6,1], index: 6, kind: input, shape index: {}]   ;;  %s1494_s7 = inlined_call_operand.vmem [shape: bf16[5,6], index: 7, kind: input, shape index: {}]   ;;  %s1495_s8 = inlined_call_operand.vmem [shape: f32[5,1], index: 8, kind: input, shape index: {}]   ;;  %s1496_s9 = inlined_call_operand.vmem [shape: bf16[3,5], index: 9, kind: input, shape index: {}]   ;;  %s1497_s10 = inlined_call_operand.vmem [shape: f32[3,1], index: 10, kind: input, shape index: {}]   ;;  %s1498_s11 = inlined_call_operand.vmem [shape: f32[3,1], index: 11, kind: input, shape index: {}]   ;;  %s1499_s12 = inlined_call_operand.<no memory space> [shape: f32[1,1], index: 12, kind: input, shape index: {}]   ;;  %s1500_s13 = inlined_call_operand.hbm [shape: f32[1,1,128], index: 13, kind: output, shape index: {}]  }
   0x1   :  { %v18_v0 = vstv %s1499_s12 }
   0x2   :  { %19 = vst [vmem:[#allocation2] sm:$0x1] %v18_v0 }
   0x3   :  { %20 = vsyncpa [#allocation4], 0 }
   0x4   :  { %21 = vsyncpa [#allocation7], 0 }
   0x5   :  { %22 = vsyncpa [#allocation5], 0  ;;  %s28_s29 = sshll.u32 %s1487_s0, 4  ;;  %s1250_s30 = smov [#allocation3]   ;;  %s29_s29 = int_to_ptr.hbm [resolvable:$true] %s28_s29 }
   0x6   :  { %s30_s14 = sshll.u32 %s1250_s30, 4  ;;  %s40_s17 = sshll.u32 %s1489_s2, 4  ;;  %s31_s14 = int_to_ptr.vmem [resolvable:$true] %s30_s14  ;;  %s41_s17 = int_to_ptr.hbm [resolvable:$true] %s40_s17 }
   0x7   :  { %33 = dma.hbm_to_vmem [thread:$0]  %s29_s29, 512, %s31_s14, [#allocation4]  }
   0x8   :  { %s1251_s18 = smov [#allocation6]   ;;  %s1252_s19 = smov 128  }
   0x9   :  { %s42_s12 = sshll.u32 %s1251_s18, 4  ;;  %s1253_s20 = smov 8   ;;  %s43_s12 = int_to_ptr.vmem [resolvable:$true] %s42_s12 }
   0xa   :  { %48 = dma.hbm_to_vmem [thread:$0]  %s41_s17, 16384, %s43_s12, [#allocation7], %s1252_s19, %s1252_s19, %s1253_s20  }
   0xb   :  { %1244 = dma.done.wait [#allocation4], 512  }
   0xc   :  { %1245 = vsyncadd [#allocation4], 4294966784 }
   0xd   :  { %1246 = dma.done.wait [#allocation7], 16384  }
   0xe   :  { %1247 = vsyncadd [#allocation7], 4294950912  ;;  %vm113_vm0 = vcmask 1041408   ;;  %v1254_v1 = vmov 0   ;;  %vm114_vm1 = vcmask 1042432   ;;  %v1255_v2 = vmov 65535  }
   0xf   :  { %1169 = vset.pattern.permute.xlu0 %v1254_v1  ;;  %1170 = vset.pattern.permute.xlu1 %v1254_v1  ;;  %v115_v3 = vsel %vm113_vm0, 4294967295, %v1255_v2  ;;  %v78_v4 = vld [vmem:[#allocation3] sm:$0x77]  ;;  %v79_v6 = vld [vmem:[#allocation3 + $0x8] sm:$0x77]  ;;  %vm109_vm2 = vcmask 39936  }
  0x10   :  { %1171 = vset.pattern.permute.xlu2 %v1254_v1  ;;  %v1337_v5 = vsel %vm114_vm1, %v115_v3, 0  ;;  %v93_v7 = vunpack.c.l.b16 %v78_v4  ;;  %v94_v8 = vunpack.c.h.b16 %v78_v4  ;;  %v95_v9 = vunpack.c.l.b16 %v79_v6  ;;  %v83_v11 = vld [vmem:[%s1491_s4] sm:$0x7f]  ;;  %v80_v12 = vld [vmem:[#allocation3 + $0x10] sm:$0x77]  ;;  %s1119_s16 = sshll.u32 %s1500_s13, 4  ;;  %s1120_s16 = int_to_ptr.hbm [resolvable:$true] %s1119_s16 }
  0x11   :  { %v96_v10 = vunpack.c.h.b16 %v79_v6  ;;  %v81_v13 = vld [vmem:[#allocation3 + $0x18] sm:$0x77]  ;;  %86 = vperm.xlu0 %1169, %v83_v11   ;;  %v97_v14 = vunpack.c.l.b16 %v80_v12  ;;  %v98_v15 = vunpack.c.h.b16 %v80_v12  ;;  %v82_v32 = vld [vmem:[%s1490_s3] sm:$0xf]  ;;  %vm272_vm3 = vcmask 1043456  }
  0x12   :  { %v99_v16 = vunpack.c.l.b16 %v81_v13  ;;  %v100_v17 = vunpack.c.h.b16 %v81_v13  ;;  %v101_v18 = vpack.c.b16 %v93_v7, %v93_v7  ;;  %v102_v19 = vpack.c.b16 %v94_v8, %v94_v8  ;;  %v262_v35 = vld [vmem:[%s1493_s6] sm:$0x3f] }
  0x13   :  { %v103_v20 = vpack.c.b16 %v95_v9, %v95_v9  ;;  %v104_v21 = vpack.c.b16 %v96_v10, %v96_v10  ;;  %v105_v22 = vpack.c.b16 %v97_v14, %v97_v14  ;;  %v106_v23 = vpack.c.b16 %v98_v15, %v98_v15  ;;  %v261_v55 = vld [vmem:[%s1492_s5] sm:$0x7] }
  0x14   :  { %v107_v24 = vpack.c.b16 %v99_v16, %v99_v16  ;;  %v108_v25 = vpack.c.b16 %v100_v17, %v100_v17  ;;  %v118_v26 = vand.u32 %v1337_v5, %v101_v18  ;;  %v121_v27 = vand.u32 %v1337_v5, %v102_v19 }
  0x15   :  { %v124_v28 = vand.u32 %v1337_v5, %v103_v20  ;;  %v127_v29 = vand.u32 %v1337_v5, %v104_v21  ;;  %v130_v30 = vand.u32 %v1337_v5, %v105_v22  ;;  %v133_v31 = vand.u32 %v1337_v5, %v106_v23 }
  0x16   :  { %148 = vmatpush.bf16.msra.mxu0 %v118_v26  ;;  %161 = vmatpush.bf16.msra.mxu1 %v121_v27  ;;  %v136_v33 = vand.u32 %v1337_v5, %v107_v24  ;;  %v139_v34 = vand.u32 %v1337_v5, %v108_v25  ;;  %v273_v40 = vsel %vm114_vm1, 4294967295, %v1255_v2  ;;  %vm268_vm4 = vcmask 56320   ;;  %v420_v25 = vld [vmem:[%s1495_s8] sm:$0x1f] }
  0x17   :  { %174 = vmatpush.bf16.msra.mxu2 %v124_v28  ;;  %187 = vmatpush.bf16.msra.mxu3 %v127_v29  ;;  %v274_v44 = vsel %vm272_vm3, %v273_v40, 0  ;;  %vm426_vm5 = vcmask 48128   ;;  %v575_v40 = vld [vmem:[%s1497_s10] sm:$0x7] }
  0x18   :  { %423 = vperm.xlu1 %1170, %v420_v25  }
  0x19   :  { %1130 = vmatmul.msk.bf16.vlgmr.msra.gmra.mxu0 %vm109_vm2, %v82_v32  ;;  %1131 = vmatmul.msk.bf16.vlgmr.msra.gmra.mxu1 %vm109_vm2, %v82_v32 }
  0x1a   :  { %200 = vmatpush.bf16.msrb.mxu0 %v130_v30  ;;  %213 = vmatpush.bf16.msrb.mxu1 %v133_v31 }
  0x1b   :  { %1132 = vmatmul.msk.bf16.vlgmr.msra.gmra.mxu2 %vm109_vm2, %v82_v32  ;;  %1133 = vmatmul.msk.bf16.vlgmr.msra.gmra.mxu3 %vm109_vm2, %v82_v32 }
  0x1c   :  { %226 = vmatpush.bf16.msrb.mxu2 %v136_v33  ;;  %239 = vmatpush.bf16.msrb.mxu3 %v139_v34 }
  0x1d   :  { %265 = vperm.xlu0 %1169, %v262_v35  }
  0x20   :  { %578 = vperm.xlu1 %1170, %v575_v40  }
  0x29   :  { %1134 = vmatmul.msk.bf16.vlgmr.msrb.gmra.mxu0 %vm109_vm2, %v82_v32  ;;  %1135 = vmatmul.msk.bf16.vlgmr.msrb.gmra.mxu1 %vm109_vm2, %v82_v32 }
  0x2b   :  { %1136 = vmatmul.msk.bf16.vlgmr.msrb.gmra.mxu2 %vm109_vm2, %v82_v32  ;;  %1137 = vmatmul.msk.bf16.vlgmr.msrb.gmra.mxu3 %vm109_vm2, %v82_v32 }
  0x83   :  { %v87_v36 = vpop.permute.xlu0 %86 }
  0x8f   :  { %v266_v26 = vpop.permute.xlu0 %265 }
  0x96   :  { %v150_v37 = vpop.f32.mrf.mxu0  ;;  %v163_v38 = vpop.f32.mrf.mxu1 }
  0x97   :  { %v151_v39 = vadd.f32 %v150_v37, %v87_v36  ;;  %v164_v41 = vadd.f32 %v163_v38, %v87_v36 }
  0x99   :  { %v245_v42 = vmax.f32 %v151_v39, 0.0  ;;  %v246_v43 = vmax.f32 %v164_v41, 0.0  ;;  %v419_v39 = vld [vmem:[%s1494_s7] sm:$0x7] }
  0x9b   :  { %v253_v45 = vpack.c.bf16 %v245_v42, %v245_v42  ;;  %v254_v46 = vpack.c.bf16 %v246_v43, %v246_v43 }
  0x9d   :  { %v276_v47 = vand.u32 %v274_v44, %v253_v45  ;;  %v279_v48 = vand.u32 %v274_v44, %v254_v46 }
  0x9e   :  { %v176_v49 = vpop.f32.mrf.mxu2  ;;  %v189_v50 = vpop.f32.mrf.mxu3 }
  0x9f   :  { %v177_v51 = vadd.f32 %v176_v49, %v87_v36  ;;  %v190_v52 = vadd.f32 %v189_v50, %v87_v36  ;;  %v152_v53 = vpop.f32.mrf.mxu0  ;;  %v165_v54 = vpop.f32.mrf.mxu1  ;;  %306 = vmatpush.bf16.msra.mxu0 %v276_v47  ;;  %319 = vmatpush.bf16.msra.mxu1 %v279_v48 }
  0xa1   :  { %v247_v56 = vmax.f32 %v177_v51, 0.0  ;;  %v248_v57 = vmax.f32 %v190_v52, 0.0 }
  0xa2   :  { %1138 = vmatmul.msk.bf16.vlgmr.msra.gmra.mxu0 %vm268_vm4, %v261_v55  ;;  %1139 = vmatmul.msk.bf16.vlgmr.msra.gmra.mxu1 %vm268_vm4, %v261_v55 }
  0xa3   :  { %v255_v58 = vpack.c.bf16 %v247_v56, %v247_v56  ;;  %v256_v59 = vpack.c.bf16 %v248_v57, %v248_v57 }
  0xa5   :  { %v282_v60 = vand.u32 %v274_v44, %v255_v58  ;;  %v285_v61 = vand.u32 %v274_v44, %v256_v59 }
  0xa6   :  { %v178_v62 = vpop.f32.mrf.mxu2  ;;  %v191_v63 = vpop.f32.mrf.mxu3 }
  0xa7   :  { %332 = vmatpush.bf16.msra.mxu2 %v282_v60  ;;  %345 = vmatpush.bf16.msra.mxu3 %v285_v61  ;;  %v202_v0 = vpop.f32.mrf.mxu0  ;;  %v215_v1 = vpop.f32.mrf.mxu1 }
  0xa8   :  { %v203_v2 = vadd.f32 %v202_v0, %v87_v36  ;;  %v216_v3 = vadd.f32 %v215_v1, %v87_v36 }
  0xaa   :  { %v249_v4 = vmax.f32 %v203_v2, 0.0  ;;  %v250_v6 = vmax.f32 %v216_v3, 0.0  ;;  %1140 = vmatmul.msk.bf16.vlgmr.msra.gmra.mxu2 %vm268_vm4, %v261_v55  ;;  %1141 = vmatmul.msk.bf16.vlgmr.msra.gmra.mxu3 %vm268_vm4, %v261_v55 }
  0xac   :  { %v257_v7 = vpack.c.bf16 %v249_v4, %v249_v4  ;;  %v258_v8 = vpack.c.bf16 %v250_v6, %v250_v6 }
  0xae   :  { %v288_v9 = vand.u32 %v274_v44, %v257_v7  ;;  %v291_v10 = vand.u32 %v274_v44, %v258_v8  ;;  %v228_v11 = vpop.f32.mrf.mxu2  ;;  %v241_v12 = vpop.f32.mrf.mxu3 }
  0xaf   :  { %v229_v13 = vadd.f32 %v228_v11, %v87_v36  ;;  %v242_v14 = vadd.f32 %v241_v12, %v87_v36  ;;  %v204_v15 = vpop.f32.mrf.mxu0  ;;  %v217_v16 = vpop.f32.mrf.mxu1 }
  0xb0   :  { %358 = vmatpush.bf16.msrb.mxu0 %v288_v9  ;;  %371 = vmatpush.bf16.msrb.mxu1 %v291_v10 }
  0xb1   :  { %v251_v17 = vmax.f32 %v229_v13, 0.0  ;;  %v252_v18 = vmax.f32 %v242_v14, 0.0  ;;  %v1401_v14 = vpop.permute.xlu1 %423 }
  0xb3   :  { %v259_v19 = vpack.c.bf16 %v251_v17, %v251_v17  ;;  %v260_v20 = vpack.c.bf16 %v252_v18, %v252_v18  ;;  %1142 = vmatmul.msk.bf16.vlgmr.msrb.gmra.mxu0 %vm268_vm4, %v261_v55  ;;  %1143 = vmatmul.msk.bf16.vlgmr.msrb.gmra.mxu1 %vm268_vm4, %v261_v55 }
  0xb5   :  { %v294_v21 = vand.u32 %v274_v44, %v259_v19  ;;  %v297_v22 = vand.u32 %v274_v44, %v260_v20 }
  0xb6   :  { %v230_v23 = vpop.f32.mrf.mxu2  ;;  %v243_v24 = vpop.f32.mrf.mxu3 }
  0xb7   :  { %384 = vmatpush.bf16.msrb.mxu2 %v294_v21  ;;  %397 = vmatpush.bf16.msrb.mxu3 %v297_v22 }
  0xba   :  { %1144 = vmatmul.msk.bf16.vlgmr.msrb.gmra.mxu2 %vm268_vm4, %v261_v55  ;;  %1145 = vmatmul.msk.bf16.vlgmr.msrb.gmra.mxu3 %vm268_vm4, %v261_v55 }
 0x11f   :  { %v308_v27 = vpop.f32.mrf.mxu0  ;;  %v321_v28 = vpop.f32.mrf.mxu1 }
 0x120   :  { %v309_v29 = vadd.f32 %v308_v27, %v266_v26  ;;  %v322_v30 = vadd.f32 %v321_v28, %v266_v26  ;;  %v1410_v27 = vld [vmem:[%s1496_s9] sm:$0x3] }
 0x121   :  { %v720_v28 = vld [vmem:[%s1498_s11] sm:$0x7] }
 0x122   :  { %v403_v31 = vmax.f32 %v309_v29, 0.0  ;;  %v404_v32 = vmax.f32 %v322_v30, 0.0  ;;  %723 = vperm.xlu2 %1171, %v720_v28   ;;  %v835_v28 = vld [vmem:[#allocation6 + $0x98] sm:$0xff] }
 0x124   :  { %v411_v33 = vpack.c.bf16 %v403_v31, %v403_v31  ;;  %v412_v34 = vpack.c.bf16 %v404_v32, %v404_v32 }
 0x126   :  { %v431_v35 = vsel %vm114_vm1, %v411_v33, 0  ;;  %v434_v36 = vsel %vm114_vm1, %v412_v34, 0 }
 0x127   :  { %v310_v37 = vpop.f32.mrf.mxu0  ;;  %v323_v38 = vpop.f32.mrf.mxu1  ;;  %461 = vmatpush.bf16.msra.mxu0 %v431_v35  ;;  %474 = vmatpush.bf16.msra.mxu1 %v434_v36 }
 0x12a   :  { %1146 = vmatmul.msk.bf16.vlgmr.msra.gmra.mxu0 %vm426_vm5, %v419_v39  ;;  %1147 = vmatmul.msk.bf16.vlgmr.msra.gmra.mxu1 %vm426_vm5, %v419_v39 }
 0x12d   :  { %v334_v41 = vpop.f32.mrf.mxu2  ;;  %v347_v42 = vpop.f32.mrf.mxu3 }
 0x12e   :  { %v335_v43 = vadd.f32 %v334_v41, %v266_v26  ;;  %v348_v44 = vadd.f32 %v347_v42, %v266_v26 }
 0x130   :  { %v405_v45 = vmax.f32 %v335_v43, 0.0  ;;  %v406_v46 = vmax.f32 %v348_v44, 0.0  ;;  %v360_v47 = vpop.f32.mrf.mxu0  ;;  %v373_v48 = vpop.f32.mrf.mxu1 }
 0x131   :  { %v361_v49 = vadd.f32 %v360_v47, %v266_v26  ;;  %v374_v50 = vadd.f32 %v373_v48, %v266_v26  ;;  %v831_v48 = vld [vmem:[#allocation6 + $0x78] sm:$0xff] }
 0x132   :  { %v413_v51 = vpack.c.bf16 %v405_v45, %v405_v45  ;;  %v414_v52 = vpack.c.bf16 %v406_v46, %v406_v46 }
 0x133   :  { %v407_v53 = vmax.f32 %v361_v49, 0.0  ;;  %v408_v54 = vmax.f32 %v374_v50, 0.0  ;;  %v847_v49 = vld [vmem:[#allocation6 + $0xf8] sm:$0xff] }
 0x134   :  { %v437_v55 = vsel %vm114_vm1, %v413_v51, 0  ;;  %v440_v56 = vsel %vm114_vm1, %v414_v52, 0 }
 0x135   :  { %v415_v57 = vpack.c.bf16 %v407_v53, %v407_v53  ;;  %v416_v58 = vpack.c.bf16 %v408_v54, %v408_v54  ;;  %v336_v59 = vpop.f32.mrf.mxu2  ;;  %v349_v60 = vpop.f32.mrf.mxu3  ;;  %487 = vmatpush.bf16.msra.mxu2 %v437_v55  ;;  %500 = vmatpush.bf16.msra.mxu3 %v440_v56  ;;  %v830_v56 = vld [vmem:[#allocation6 + $0x70] sm:$0xff] }
 0x136   :  { %v845_v59 = vld [vmem:[#allocation6 + $0xe8] sm:$0xff]  ;;  %v828_v60 = vld [vmem:[#allocation6 + $0x60] sm:$0xff] }
 0x137   :  { %v443_v61 = vsel %vm114_vm1, %v415_v57, 0  ;;  %v446_v62 = vsel %vm114_vm1, %v416_v58, 0  ;;  %v846_v57 = vld [vmem:[#allocation6 + $0xf0] sm:$0xff]  ;;  %v829_v58 = vld [vmem:[#allocation6 + $0x68] sm:$0xff] }
 0x138   :  { %1148 = vmatmul.msk.bf16.vlgmr.msra.gmra.mxu2 %vm426_vm5, %v419_v39  ;;  %1149 = vmatmul.msk.bf16.vlgmr.msra.gmra.mxu3 %vm426_vm5, %v419_v39  ;;  %v362_v63 = vpop.f32.mrf.mxu0  ;;  %v375_v0 = vpop.f32.mrf.mxu1 }
 0x139   :  { %513 = vmatpush.bf16.msrb.mxu0 %v443_v61  ;;  %526 = vmatpush.bf16.msrb.mxu1 %v446_v62  ;;  %v844_v61 = vld [vmem:[#allocation6 + $0xe0] sm:$0xff]  ;;  %v827_v62 = vld [vmem:[#allocation6 + $0x58] sm:$0xff] }
 0x13a   :  { %v843_v63 = vld [vmem:[#allocation6 + $0xd8] sm:$0xff] }
 0x13c   :  { %1150 = vmatmul.msk.bf16.vlgmr.msrb.gmra.mxu0 %vm426_vm5, %v419_v39  ;;  %1151 = vmatmul.msk.bf16.vlgmr.msrb.gmra.mxu1 %vm426_vm5, %v419_v39 }
 0x13d   :  { %v386_v1 = vpop.f32.mrf.mxu2  ;;  %v399_v2 = vpop.f32.mrf.mxu3 }
 0x13e   :  { %v387_v3 = vadd.f32 %v386_v1, %v266_v26  ;;  %v400_v4 = vadd.f32 %v399_v2, %v266_v26  ;;  %v826_v2 = vld [vmem:[#allocation6 + $0x50] sm:$0xff] }
 0x140   :  { %v409_v6 = vmax.f32 %v387_v3, 0.0  ;;  %v410_v7 = vmax.f32 %v400_v4, 0.0  ;;  %v842_v3 = vld [vmem:[#allocation6 + $0xd0] sm:$0xff] }
 0x142   :  { %v417_v8 = vpack.c.bf16 %v409_v6, %v409_v6  ;;  %v418_v9 = vpack.c.bf16 %v410_v7, %v410_v7  ;;  %v825_v7 = vld [vmem:[#allocation6 + $0x48] sm:$0xff] }
 0x144   :  { %v449_v10 = vsel %vm114_vm1, %v417_v8, 0  ;;  %v452_v11 = vsel %vm114_vm1, %v418_v9, 0  ;;  %v841_v8 = vld [vmem:[#allocation6 + $0xc8] sm:$0xff] }
 0x145   :  { %v388_v12 = vpop.f32.mrf.mxu2  ;;  %v401_v13 = vpop.f32.mrf.mxu3  ;;  %539 = vmatpush.bf16.msrb.mxu2 %v449_v10  ;;  %552 = vmatpush.bf16.msrb.mxu3 %v452_v11  ;;  %v824_v11 = vld [vmem:[#allocation6 + $0x40] sm:$0xff] }
 0x146   :  { %v840_v12 = vld [vmem:[#allocation6 + $0xc0] sm:$0xff] }
 0x148   :  { %1152 = vmatmul.msk.bf16.vlgmr.msrb.gmra.mxu2 %vm426_vm5, %v419_v39  ;;  %1153 = vmatmul.msk.bf16.vlgmr.msrb.gmra.mxu3 %vm426_vm5, %v419_v39  ;;  %v944_v39 = vld [vmem:[#allocation2] sm:$0x1] }
 0x149   :  { %947 = vperm.xlu2 %1171, %v944_v39   ;;  %v832_v39 = vld [vmem:[#allocation6 + $0x80] sm:$0xff] }
 0x1a7   :  { %v463_v15 = vpop.f32.mrf.mxu0  ;;  %v476_v16 = vpop.f32.mrf.mxu1 }
 0x1a8   :  { %v464_v17 = vadd.f32 %v463_v15, %v1401_v14  ;;  %v477_v18 = vadd.f32 %v476_v16, %v1401_v14 }
 0x1aa   :  { %v558_v19 = vmax.f32 %v464_v17, 0.0  ;;  %v559_v20 = vmax.f32 %v477_v18, 0.0  ;;  %v839_v18 = vld [vmem:[#allocation6 + $0xb8] sm:$0xff] }
 0x1ac   :  { %v566_v21 = vpack.c.bf16 %v558_v19, %v558_v19  ;;  %v567_v22 = vpack.c.bf16 %v559_v20, %v559_v20 }
 0x1ae   :  { %v585_v23 = vand.u32 %v566_v21, %v1337_v5  ;;  %v588_v24 = vand.u32 %v567_v22, %v1337_v5  ;;  %v822_v21 = vld [vmem:[#allocation6 + $0x30] sm:$0xff] }
 0x1af   :  { %v465_v25 = vpop.f32.mrf.mxu0  ;;  %v478_v26 = vpop.f32.mrf.mxu1  ;;  %v838_v22 = vld [vmem:[#allocation6 + $0xb0] sm:$0xff] }
 0x1b0   :  { %615 = vmatpush.bf16.msra.mxu0 %v585_v23  ;;  %628 = vmatpush.bf16.msra.mxu1 %v588_v24  ;;  %v821_v23 = vld [vmem:[#allocation6 + $0x28] sm:$0xff]  ;;  %v820_v24 = vld [vmem:[#allocation6 + $0x20] sm:$0xff]  ;;  %v819_v26 = vld [vmem:[#allocation6 + $0x18] sm:$0xff] }
 0x1b1   :  { %v836_v25 = vld [vmem:[#allocation6 + $0xa0] sm:$0xff] }
 0x1b3   :  { %1154 = vmatmul.msk.bf16.vlgmr.msra.gmra.mxu0 %vm109_vm2, %v1410_v27  ;;  %1155 = vmatmul.msk.bf16.vlgmr.msra.gmra.mxu1 %vm109_vm2, %v1410_v27 }
 0x1b9   :  { %v515_v29 = vpop.f32.mrf.mxu0  ;;  %v528_v30 = vpop.f32.mrf.mxu1 }
 0x1ba   :  { %v516_v31 = vadd.f32 %v515_v29, %v1401_v14  ;;  %v529_v32 = vadd.f32 %v528_v30, %v1401_v14  ;;  %v863_v29 = vld [vmem:[#allocation6 + $0x178] sm:$0xff] }
 0x1bb   :  { %v489_v33 = vpop.f32.mrf.mxu2  ;;  %v502_v34 = vpop.f32.mrf.mxu3  ;;  %v879_v30 = vld [vmem:[#allocation6 + $0x1f8] sm:$0xff] }
 0x1bc   :  { %v562_v35 = vmax.f32 %v516_v31, 0.0  ;;  %v563_v36 = vmax.f32 %v529_v32, 0.0  ;;  %v490_v37 = vadd.f32 %v489_v33, %v1401_v14  ;;  %v503_v38 = vadd.f32 %v502_v34, %v1401_v14  ;;  %v818_v31 = vld [vmem:[#allocation6 + $0x10] sm:$0xff]  ;;  %v817_v34 = vld [vmem:[#allocation6 + $0x8] sm:$0xff] }
 0x1bd   :  { %v862_v32 = vld [vmem:[#allocation6 + $0x170] sm:$0xff] }
 0x1be   :  { %v570_v40 = vpack.c.bf16 %v562_v35, %v562_v35  ;;  %v571_v41 = vpack.c.bf16 %v563_v36, %v563_v36  ;;  %v560_v42 = vmax.f32 %v490_v37, 0.0  ;;  %v561_v43 = vmax.f32 %v503_v38, 0.0  ;;  %v878_v33 = vld [vmem:[#allocation6 + $0x1f0] sm:$0xff]  ;;  %v833_v35 = vld [vmem:[#allocation6 + $0x88] sm:$0xff]  ;;  %v816_v38 = vld [vmem:[#allocation6] sm:$0xff] }
 0x1bf   :  { %v861_v36 = vld [vmem:[#allocation6 + $0x168] sm:$0xff] }
 0x1c0   :  { %v597_v44 = vand.u32 %v570_v40, %v1337_v5  ;;  %v600_v45 = vand.u32 %v571_v41, %v1337_v5  ;;  %v568_v46 = vpack.c.bf16 %v560_v42, %v560_v42  ;;  %v569_v47 = vpack.c.bf16 %v561_v43, %v561_v43  ;;  %v877_v37 = vld [vmem:[#allocation6 + $0x1e8] sm:$0xff]  ;;  %v860_v40 = vld [vmem:[#allocation6 + $0x160] sm:$0xff]  ;;  %v895_v42 = vld [vmem:[#allocation6 + $0x278] sm:$0xff] }
 0x1c1   :  { %v517_v50 = vpop.f32.mrf.mxu0  ;;  %v530_v51 = vpop.f32.mrf.mxu1  ;;  %v876_v41 = vld [vmem:[#allocation6 + $0x1e0] sm:$0xff]  ;;  %v911_v43 = vld [vmem:[#allocation6 + $0x2f8] sm:$0xff] }
 0x1c2   :  { %v591_v52 = vand.u32 %v568_v46, %v1337_v5  ;;  %v594_v53 = vand.u32 %v569_v47, %v1337_v5  ;;  %667 = vmatpush.bf16.msrb.mxu0 %v597_v44  ;;  %680 = vmatpush.bf16.msrb.mxu1 %v600_v45  ;;  %v859_v44 = vld [vmem:[#allocation6 + $0x158] sm:$0xff]  ;;  %v894_v46 = vld [vmem:[#allocation6 + $0x270] sm:$0xff]  ;;  %v893_v50 = vld [vmem:[#allocation6 + $0x268] sm:$0xff] }
 0x1c3   :  { %v491_v54 = vpop.f32.mrf.mxu2  ;;  %v504_v55 = vpop.f32.mrf.mxu3  ;;  %v875_v45 = vld [vmem:[#allocation6 + $0x1d8] sm:$0xff]  ;;  %v910_v47 = vld [vmem:[#allocation6 + $0x2f0] sm:$0xff]  ;;  %v909_v51 = vld [vmem:[#allocation6 + $0x2e8] sm:$0xff] }
 0x1c4   :  { %641 = vmatpush.bf16.msra.mxu2 %v591_v52  ;;  %654 = vmatpush.bf16.msra.mxu3 %v594_v53  ;;  %v857_v52 = vld [vmem:[#allocation6 + $0x148] sm:$0xff]  ;;  %v892_v54 = vld [vmem:[#allocation6 + $0x260] sm:$0xff] }
 0x1c5   :  { %1158 = vmatmul.msk.bf16.vlgmr.msrb.gmra.mxu0 %vm109_vm2, %v1410_v27  ;;  %1159 = vmatmul.msk.bf16.vlgmr.msrb.gmra.mxu1 %vm109_vm2, %v1410_v27  ;;  %v873_v53 = vld [vmem:[#allocation6 + $0x1c8] sm:$0xff]  ;;  %v908_v55 = vld [vmem:[#allocation6 + $0x2e0] sm:$0xff] }
 0x1c6   :  { %951 = vmatpush.msra.mxu0 %v831_v48  ;;  %971 = vmatpush.msra.mxu1 %v847_v49  ;;  %v858_v48 = vld [vmem:[#allocation6 + $0x150] sm:$0xff] }
 0x1c7   :  { %1156 = vmatmul.msk.bf16.vlgmr.msra.gmra.mxu2 %vm109_vm2, %v1410_v27  ;;  %1157 = vmatmul.msk.bf16.vlgmr.msra.gmra.mxu3 %vm109_vm2, %v1410_v27  ;;  %v874_v49 = vld [vmem:[#allocation6 + $0x1d0] sm:$0xff] }
 0x1c8   :  { %952 = vmatpush.msra.mxu0 %v830_v56  ;;  %972 = vmatpush.msra.mxu1 %v846_v57  ;;  %v856_v56 = vld [vmem:[#allocation6 + $0x140] sm:$0xff] }
 0x1c9   :  { %v872_v57 = vld [vmem:[#allocation6 + $0x1c0] sm:$0xff] }
 0x1ca   :  { %953 = vmatpush.msra.mxu0 %v829_v58  ;;  %973 = vmatpush.msra.mxu1 %v845_v59  ;;  %v891_v58 = vld [vmem:[#allocation6 + $0x258] sm:$0xff] }
 0x1cb   :  { %v541_v0 = vpop.f32.mrf.mxu2  ;;  %v554_v1 = vpop.f32.mrf.mxu3  ;;  %v907_v59 = vld [vmem:[#allocation6 + $0x2d8] sm:$0xff] }
 0x1cc   :  { %954 = vmatpush.msra.mxu0 %v828_v60  ;;  %974 = vmatpush.msra.mxu1 %v844_v61  ;;  %v542_v4 = vadd.f32 %v541_v0, %v1401_v14  ;;  %v555_v6 = vadd.f32 %v554_v1, %v1401_v14  ;;  %v823_v14 = vld [vmem:[#allocation6 + $0x38] sm:$0xff]  ;;  %v854_v0 = vld [vmem:[#allocation6 + $0x130] sm:$0xff] }
 0x1cd   :  { %v855_v60 = vld [vmem:[#allocation6 + $0x138] sm:$0xff]  ;;  %v870_v1 = vld [vmem:[#allocation6 + $0x1b0] sm:$0xff] }
 0x1ce   :  { %955 = vmatpush.msra.mxu0 %v827_v62  ;;  %975 = vmatpush.msra.mxu1 %v843_v63  ;;  %v564_v9 = vmax.f32 %v542_v4, 0.0  ;;  %v565_v10 = vmax.f32 %v555_v6, 0.0  ;;  %v871_v61 = vld [vmem:[#allocation6 + $0x1b8] sm:$0xff]  ;;  %v890_v62 = vld [vmem:[#allocation6 + $0x250] sm:$0xff]  ;;  %v853_v4 = vld [vmem:[#allocation6 + $0x128] sm:$0xff] }
 0x1cf   :  { %v906_v63 = vld [vmem:[#allocation6 + $0x2d0] sm:$0xff]  ;;  %v869_v6 = vld [vmem:[#allocation6 + $0x1a8] sm:$0xff] }
 0x1d0   :  { %956 = vmatpush.msra.mxu0 %v826_v2  ;;  %976 = vmatpush.msra.mxu1 %v842_v3  ;;  %v572_v13 = vpack.c.bf16 %v564_v9, %v564_v9  ;;  %v573_v15 = vpack.c.bf16 %v565_v10, %v565_v10  ;;  %v889_v2 = vld [vmem:[#allocation6 + $0x248] sm:$0xff]  ;;  %v852_v9 = vld [vmem:[#allocation6 + $0x120] sm:$0xff] }
 0x1d1   :  { %v905_v3 = vld [vmem:[#allocation6 + $0x2c8] sm:$0xff]  ;;  %v868_v10 = vld [vmem:[#allocation6 + $0x1a0] sm:$0xff] }
 0x1d2   :  { %957 = vmatpush.msra.mxu0 %v825_v7  ;;  %977 = vmatpush.msra.mxu1 %v841_v8  ;;  %v603_v16 = vand.u32 %v572_v13, %v1337_v5  ;;  %v606_v17 = vand.u32 %v573_v15, %v1337_v5  ;;  %v837_v5 = vld [vmem:[#allocation6 + $0xa8] sm:$0xff]  ;;  %v888_v7 = vld [vmem:[#allocation6 + $0x240] sm:$0xff]  ;;  %v851_v13 = vld [vmem:[#allocation6 + $0x118] sm:$0xff] }
 0x1d3   :  { %v543_v19 = vpop.f32.mrf.mxu2  ;;  %v556_v20 = vpop.f32.mrf.mxu3  ;;  %v904_v8 = vld [vmem:[#allocation6 + $0x2c0] sm:$0xff]  ;;  %v867_v15 = vld [vmem:[#allocation6 + $0x198] sm:$0xff] }
 0x1d4   :  { %958 = vmatpush.msra.mxu0 %v824_v11  ;;  %978 = vmatpush.msra.mxu1 %v840_v12  ;;  %v887_v11 = vld [vmem:[#allocation6 + $0x238] sm:$0xff]  ;;  %v885_v19 = vld [vmem:[#allocation6 + $0x228] sm:$0xff] }
 0x1d5   :  { %693 = vmatpush.bf16.msrb.mxu2 %v603_v16  ;;  %706 = vmatpush.bf16.msrb.mxu3 %v606_v17  ;;  %v903_v12 = vld [vmem:[#allocation6 + $0x2b8] sm:$0xff]  ;;  %v886_v16 = vld [vmem:[#allocation6 + $0x230] sm:$0xff]  ;;  %v901_v20 = vld [vmem:[#allocation6 + $0x2a8] sm:$0xff] }
 0x1d6   :  { %959 = vmatpush.msra.mxu0 %v823_v14  ;;  %979 = vmatpush.msra.mxu1 %v839_v18  ;;  %v902_v17 = vld [vmem:[#allocation6 + $0x2b0] sm:$0xff] }
 0x1d7   :  { %v850_v14 = vld [vmem:[#allocation6 + $0x110] sm:$0xff] }
 0x1d8   :  { %1160 = vmatmul.msk.bf16.vlgmr.msrb.gmra.mxu2 %vm109_vm2, %v1410_v27  ;;  %1161 = vmatmul.msk.bf16.vlgmr.msrb.gmra.mxu3 %vm109_vm2, %v1410_v27  ;;  %v834_v27 = vld [vmem:[#allocation6 + $0x90] sm:$0xff] }
 0x1d9   :  { %960 = vmatpush.msra.mxu0 %v822_v21  ;;  %980 = vmatpush.msra.mxu1 %v838_v22  ;;  %v866_v18 = vld [vmem:[#allocation6 + $0x190] sm:$0xff]  ;;  %v849_v21 = vld [vmem:[#allocation6 + $0x108] sm:$0xff] }
 0x1da   :  { %991 = vmatpush.msra.mxu2 %v863_v29  ;;  %1011 = vmatpush.msra.mxu3 %v879_v30  ;;  %v865_v22 = vld [vmem:[#allocation6 + $0x188] sm:$0xff]  ;;  %v899_v29 = vld [vmem:[#allocation6 + $0x298] sm:$0xff] }
 0x1db   :  { %961 = vmatpush.msra.mxu0 %v821_v23  ;;  %981 = vmatpush.msra.mxu1 %v837_v5  ;;  %v884_v23 = vld [vmem:[#allocation6 + $0x220] sm:$0xff]  ;;  %v927_v30 = vld [vmem:[#allocation6 + $0x378] sm:$0xff] }
 0x1dc   :  { %992 = vmatpush.msra.mxu2 %v862_v32  ;;  %1012 = vmatpush.msra.mxu3 %v878_v33  ;;  %v900_v5 = vld [vmem:[#allocation6 + $0x2a0] sm:$0xff]  ;;  %v943_v32 = vld [vmem:[#allocation6 + $0x3f8] sm:$0xff] }
 0x1dd   :  { %962 = vmatpush.msra.mxu0 %v820_v24  ;;  %982 = vmatpush.msra.mxu1 %v836_v25  ;;  %v848_v24 = vld [vmem:[#allocation6 + $0x100] sm:$0xff] }
 0x1de   :  { %993 = vmatpush.msra.mxu2 %v861_v36  ;;  %1013 = vmatpush.msra.mxu3 %v877_v37  ;;  %v864_v25 = vld [vmem:[#allocation6 + $0x180] sm:$0xff]  ;;  %v898_v36 = vld [vmem:[#allocation6 + $0x290] sm:$0xff] }
 0x1df   :  { %963 = vmatpush.msra.mxu0 %v819_v26  ;;  %983 = vmatpush.msra.mxu1 %v835_v28  ;;  %v1443_v26 = vpop.permute.xlu1 %578  ;;  %v883_v28 = vld [vmem:[#allocation6 + $0x218] sm:$0xff]  ;;  %v926_v37 = vld [vmem:[#allocation6 + $0x370] sm:$0xff] }
 0x1e0   :  { %994 = vmatpush.msra.mxu2 %v860_v40  ;;  %1014 = vmatpush.msra.mxu3 %v876_v41 }
 0x1e1   :  { %964 = vmatpush.msra.mxu0 %v818_v31  ;;  %984 = vmatpush.msra.mxu1 %v834_v27 }
 0x1e2   :  { %995 = vmatpush.msra.mxu2 %v859_v44  ;;  %1015 = vmatpush.msra.mxu3 %v875_v45  ;;  %v925_v44 = vld [vmem:[#allocation6 + $0x368] sm:$0xff] }
 0x1e3   :  { %965 = vmatpush.msra.mxu0 %v817_v34  ;;  %985 = vmatpush.msra.mxu1 %v833_v35  ;;  %v882_v35 = vld [vmem:[#allocation6 + $0x210] sm:$0xff]  ;;  %v941_v45 = vld [vmem:[#allocation6 + $0x3e8] sm:$0xff] }
 0x1e4   :  { %996 = vmatpush.msra.mxu2 %v858_v48  ;;  %1016 = vmatpush.msra.mxu3 %v874_v49  ;;  %v880_v48 = vld [vmem:[#allocation6 + $0x200] sm:$0xff] }
 0x1e5   :  { %966 = vmatpush.msra.mxu0 %v816_v38  ;;  %986 = vmatpush.msra.mxu1 %v832_v39  ;;  %v1447_v38 = vpop.permute.xlu2 %723  ;;  %v942_v39 = vld [vmem:[#allocation6 + $0x3f0] sm:$0xff]  ;;  %v896_v49 = vld [vmem:[#allocation6 + $0x280] sm:$0xff] }
 0x1e6   :  { %997 = vmatpush.msra.mxu2 %v857_v52  ;;  %1017 = vmatpush.msra.mxu3 %v873_v53 }
 0x1e7   :  { %1031 = vmatpush.msrb.mxu0 %v895_v42  ;;  %1051 = vmatpush.msrb.mxu1 %v911_v43  ;;  %v881_v42 = vld [vmem:[#allocation6 + $0x208] sm:$0xff] }
 0x1e8   :  { %998 = vmatpush.msra.mxu2 %v856_v56  ;;  %1018 = vmatpush.msra.mxu3 %v872_v57  ;;  %v897_v43 = vld [vmem:[#allocation6 + $0x288] sm:$0xff] }
 0x1e9   :  { %1032 = vmatpush.msrb.mxu0 %v894_v46  ;;  %1052 = vmatpush.msrb.mxu1 %v910_v47 }
 0x1ea   :  { %999 = vmatpush.msra.mxu2 %v855_v60  ;;  %1019 = vmatpush.msra.mxu3 %v871_v61  ;;  %v922_v60 = vld [vmem:[#allocation6 + $0x350] sm:$0xff] }
 0x1eb   :  { %1033 = vmatpush.msrb.mxu0 %v893_v50  ;;  %1053 = vmatpush.msrb.mxu1 %v909_v51  ;;  %v924_v50 = vld [vmem:[#allocation6 + $0x360] sm:$0xff]  ;;  %v938_v61 = vld [vmem:[#allocation6 + $0x3d0] sm:$0xff] }
 0x1ec   :  { %1000 = vmatpush.msra.mxu2 %v854_v0  ;;  %1020 = vmatpush.msra.mxu3 %v870_v1  ;;  %v940_v51 = vld [vmem:[#allocation6 + $0x3e0] sm:$0xff]  ;;  %v921_v0 = vld [vmem:[#allocation6 + $0x348] sm:$0xff] }
 0x1ed   :  { %1034 = vmatpush.msrb.mxu0 %v892_v54  ;;  %1054 = vmatpush.msrb.mxu1 %v908_v55  ;;  %v923_v54 = vld [vmem:[#allocation6 + $0x358] sm:$0xff]  ;;  %v937_v1 = vld [vmem:[#allocation6 + $0x3c8] sm:$0xff] }
 0x1ee   :  { %1001 = vmatpush.msra.mxu2 %v853_v4  ;;  %1021 = vmatpush.msra.mxu3 %v869_v6  ;;  %v939_v55 = vld [vmem:[#allocation6 + $0x3d8] sm:$0xff]  ;;  %v920_v6 = vld [vmem:[#allocation6 + $0x340] sm:$0xff] }
 0x1ef   :  { %1035 = vmatpush.msrb.mxu0 %v891_v58  ;;  %1055 = vmatpush.msrb.mxu1 %v907_v59  ;;  %v1456_v4 = vld [vmem:[%s1488_s1] sm:$0xff]  ;;  %s1256_s1 = smov [#allocation8]  }
 0x1f0   :  { %1002 = vmatpush.msra.mxu2 %v852_v9  ;;  %1022 = vmatpush.msra.mxu3 %v868_v10  ;;  %v919_v10 = vld [vmem:[#allocation6 + $0x338] sm:$0xff]  ;;  %s1117_s30 = sshll.u32 %s1256_s1, 4  ;;  %s1118_s30 = int_to_ptr.vmem [resolvable:$true] %s1117_s30 }
 0x1f1   :  { %1036 = vmatpush.msrb.mxu0 %v890_v62  ;;  %1056 = vmatpush.msrb.mxu1 %v906_v63 }
 0x1f2   :  { %1003 = vmatpush.msra.mxu2 %v851_v13  ;;  %1023 = vmatpush.msra.mxu3 %v867_v15  ;;  %v793_v15 = vperm.slane %v1456_v4, 1 }
 0x1f3   :  { %1037 = vmatpush.msrb.mxu0 %v889_v2  ;;  %1057 = vmatpush.msrb.mxu1 %v905_v3 }
 0x1f4   :  { %1004 = vmatpush.msra.mxu2 %v850_v14  ;;  %1024 = vmatpush.msra.mxu3 %v866_v18  ;;  %v918_v18 = vld [vmem:[#allocation6 + $0x330] sm:$0xff] }
 0x1f5   :  { %1038 = vmatpush.msrb.mxu0 %v888_v7  ;;  %1058 = vmatpush.msrb.mxu1 %v904_v8  ;;  %v936_v7 = vld [vmem:[#allocation6 + $0x3c0] sm:$0xff] }
 0x1f6   :  { %1005 = vmatpush.msra.mxu2 %v849_v21  ;;  %1025 = vmatpush.msra.mxu3 %v865_v22 }
 0x1f7   :  { %1039 = vmatpush.msrb.mxu0 %v887_v11  ;;  %1059 = vmatpush.msrb.mxu1 %v903_v12  ;;  %v792_v12 = vperm.slane %v1456_v4, 0 }
 0x1f8   :  { %1006 = vmatpush.msra.mxu2 %v848_v24  ;;  %1026 = vmatpush.msra.mxu3 %v864_v25 }
 0x1f9   :  { %1040 = vmatpush.msrb.mxu0 %v886_v16  ;;  %1060 = vmatpush.msrb.mxu1 %v902_v17  ;;  %v935_v16 = vld [vmem:[#allocation6 + $0x3b8] sm:$0xff] }
 0x1fa   :  { %1071 = vmatpush.msrb.mxu2 %v927_v30  ;;  %1091 = vmatpush.msrb.mxu3 %v943_v32  ;;  %v933_v30 = vld [vmem:[#allocation6 + $0x3a8] sm:$0xff]  ;;  %v916_v32 = vld [vmem:[#allocation6 + $0x320] sm:$0xff] }
 0x1fb   :  { %1041 = vmatpush.msrb.mxu0 %v885_v19  ;;  %1061 = vmatpush.msrb.mxu1 %v901_v20 }
 0x1fc   :  { %1072 = vmatpush.msrb.mxu2 %v926_v37  ;;  %1092 = vmatpush.msrb.mxu3 %v942_v39  ;;  %v931_v37 = vld [vmem:[#allocation6 + $0x398] sm:$0xff] }
 0x1fd   :  { %1042 = vmatpush.msrb.mxu0 %v884_v23  ;;  %1062 = vmatpush.msrb.mxu1 %v900_v5  ;;  %v934_v23 = vld [vmem:[#allocation6 + $0x3b0] sm:$0xff] }
 0x1fe   :  { %1073 = vmatpush.msrb.mxu2 %v925_v44  ;;  %1093 = vmatpush.msrb.mxu3 %v941_v45 }
 0x1ff   :  { %1043 = vmatpush.msrb.mxu0 %v883_v28  ;;  %1063 = vmatpush.msrb.mxu1 %v899_v29  ;;  %v917_v29 = vld [vmem:[#allocation6 + $0x328] sm:$0xff] }
 0x200   :  { %1074 = vmatpush.msrb.mxu2 %v924_v50  ;;  %1094 = vmatpush.msrb.mxu3 %v940_v51 }
 0x201   :  { %1044 = vmatpush.msrb.mxu0 %v882_v35  ;;  %1064 = vmatpush.msrb.mxu1 %v898_v36  ;;  %v915_v36 = vld [vmem:[#allocation6 + $0x318] sm:$0xff] }
 0x202   :  { %1075 = vmatpush.msrb.mxu2 %v923_v54  ;;  %1095 = vmatpush.msrb.mxu3 %v939_v55  ;;  %v929_v54 = vld [vmem:[#allocation6 + $0x388] sm:$0xff] }
 0x203   :  { %1045 = vmatpush.msrb.mxu0 %v881_v42  ;;  %1065 = vmatpush.msrb.mxu1 %v897_v43 }
 0x204   :  { %1076 = vmatpush.msrb.mxu2 %v922_v60  ;;  %1096 = vmatpush.msrb.mxu3 %v938_v61  ;;  %v928_v60 = vld [vmem:[#allocation6 + $0x380] sm:$0xff] }
 0x205   :  { %1046 = vmatpush.msrb.mxu0 %v880_v48  ;;  %1066 = vmatpush.msrb.mxu1 %v896_v49  ;;  %v930_v48 = vld [vmem:[#allocation6 + $0x390] sm:$0xff] }
 0x206   :  { %1077 = vmatpush.msrb.mxu2 %v921_v0  ;;  %1097 = vmatpush.msrb.mxu3 %v937_v1  ;;  %v796_v1 = vperm.slane %v1456_v4, 4 }
 0x208   :  { %1078 = vmatpush.msrb.mxu2 %v920_v6  ;;  %1098 = vmatpush.msrb.mxu3 %v936_v7 }
 0x20a   :  { %1079 = vmatpush.msrb.mxu2 %v919_v10  ;;  %1099 = vmatpush.msrb.mxu3 %v935_v16 }
 0x20c   :  { %1080 = vmatpush.msrb.mxu2 %v918_v18  ;;  %1100 = vmatpush.msrb.mxu3 %v934_v23 }
 0x20e   :  { %1081 = vmatpush.msrb.mxu2 %v917_v29  ;;  %1101 = vmatpush.msrb.mxu3 %v933_v30 }
 0x210   :  { %1082 = vmatpush.msrb.mxu2 %v916_v32 }
 0x212   :  { %1083 = vmatpush.msrb.mxu2 %v915_v36 }
 0x230   :  { %v617_v31 = vpop.f32.mrf.mxu0  ;;  %v630_v27 = vpop.f32.mrf.mxu1 }
 0x231   :  { %v618_v33 = vadd.f32 %v617_v31, %v1443_v26  ;;  %v631_v34 = vadd.f32 %v630_v27, %v1443_v26 }
 0x233   :  { %v712_v40 = vmax.f32 %v618_v33, 0.0  ;;  %v713_v41 = vmax.f32 %v631_v34, 0.0  ;;  %v932_v33 = vld [vmem:[#allocation6 + $0x3a0] sm:$0xff] }
 0x234   :  { %1102 = vmatpush.msrb.mxu3 %v932_v33 }
 0x235   :  { %v726_v46 = vmul.f32 %v1447_v38, %v712_v40  ;;  %v727_v47 = vmul.f32 %v1447_v38, %v713_v41 }
 0x236   :  { %1103 = vmatpush.msrb.mxu3 %v931_v37 }
 0x237   :  { %v734_v52 = vsel %vm114_vm1, %v726_v46, 0.0  ;;  %v741_v53 = vsel %vm114_vm1, %v727_v47, 0.0  ;;  %v914_v47 = vld [vmem:[#allocation6 + $0x310] sm:$0xff] }
 0x238   :  { %v619_v56 = vpop.f32.mrf.mxu0  ;;  %v632_v57 = vpop.f32.mrf.mxu1  ;;  %v735_v58 = vrot.slane %v734_v52, 4  ;;  %v742_v59 = vrot.slane %v741_v53, 4  ;;  %1084 = vmatpush.msrb.mxu2 %v914_v47  ;;  %1104 = vmatpush.msrb.mxu3 %v930_v48 }
 0x23a   :  { %v736_v62 = vadd.f32 %v735_v58, %v734_v52  ;;  %v743_v63 = vadd.f32 %v742_v59, %v741_v53  ;;  %v913_v53 = vld [vmem:[#allocation6 + $0x308] sm:$0xff]  ;;  %v912_v59 = vld [vmem:[#allocation6 + $0x300] sm:$0xff]  ;;  %1105 = vmatpush.msrb.mxu3 %v929_v54 }
 0x23b   :  { %1085 = vmatpush.msrb.mxu2 %v913_v53 }
 0x23c   :  { %v737_v2 = vrot.slane %v736_v62, 2  ;;  %v744_v3 = vrot.slane %v743_v63, 2  ;;  %1106 = vmatpush.msrb.mxu3 %v928_v60 }
 0x23d   :  { %1086 = vmatpush.msrb.mxu2 %v912_v59 }
 0x23e   :  { %v738_v8 = vadd.f32 %v737_v2, %v736_v62  ;;  %v745_v9 = vadd.f32 %v744_v3, %v743_v63  ;;  %v797_v2 = vperm.slane %v1456_v4, 5 }
 0x240   :  { %v739_v11 = vrot.slane %v738_v8, 1  ;;  %v746_v13 = vrot.slane %v745_v9, 1 }
 0x242   :  { %v669_v17 = vpop.f32.mrf.mxu0  ;;  %v682_v14 = vpop.f32.mrf.mxu1  ;;  %v740_v21 = vadd.f32 %v739_v11, %v738_v8  ;;  %v747_v22 = vadd.f32 %v746_v13, %v745_v9 }
 0x243   :  { %v670_v19 = vadd.f32 %v669_v17, %v1443_v26  ;;  %v683_v20 = vadd.f32 %v682_v14, %v1443_v26 }
 0x244   :  { %v808_v25 = vmul.f32 %v792_v12, %v740_v21  ;;  %v809_v28 = vmul.f32 %v793_v15, %v747_v22 }
 0x245   :  { %v716_v5 = vmax.f32 %v670_v19, 0.0  ;;  %v717_v24 = vmax.f32 %v683_v20, 0.0 }
 0x246   :  { %967 = vmatmul.f32.vlgmr.msra.gmra.mxu0 %v808_v25  ;;  %987 = vmatmul.f32.vlgmr.msra.gmra.mxu1 %v809_v28  ;;  %v795_v25 = vperm.slane %v1456_v4, 3 }
 0x247   :  { %v730_v31 = vmul.f32 %v1447_v38, %v716_v5  ;;  %v731_v27 = vmul.f32 %v1447_v38, %v717_v24  ;;  %v794_v24 = vperm.slane %v1456_v4, 2 }
 0x249   :  { %v762_v34 = vsel %vm114_vm1, %v730_v31, 0.0  ;;  %v769_v35 = vsel %vm114_vm1, %v731_v27, 0.0 }
 0x24a   :  { %v763_v39 = vrot.slane %v762_v34, 4  ;;  %v770_v40 = vrot.slane %v769_v35, 4  ;;  %v643_v41 = vpop.f32.mrf.mxu2  ;;  %v656_v42 = vpop.f32.mrf.mxu3 }
 0x24b   :  { %v644_v43 = vadd.f32 %v643_v41, %v1443_v26  ;;  %v657_v44 = vadd.f32 %v656_v42, %v1443_v26  ;;  %v671_v45 = vpop.f32.mrf.mxu0  ;;  %v684_v46 = vpop.f32.mrf.mxu1 }
 0x24c   :  { %v764_v49 = vadd.f32 %v763_v39, %v762_v34  ;;  %v771_v50 = vadd.f32 %v770_v40, %v769_v35 }
 0x24d   :  { %v714_v51 = vmax.f32 %v644_v43, 0.0  ;;  %v715_v52 = vmax.f32 %v657_v44, 0.0 }
 0x24e   :  { %v765_v55 = vrot.slane %v764_v49, 2  ;;  %v772_v56 = vrot.slane %v771_v50, 2 }
 0x24f   :  { %v728_v57 = vmul.f32 %v1447_v38, %v714_v51  ;;  %v729_v58 = vmul.f32 %v1447_v38, %v715_v52  ;;  %v799_v51 = vperm.slane %v1456_v4, 7 }
 0x250   :  { %v766_v61 = vadd.f32 %v765_v55, %v764_v49  ;;  %v773_v62 = vadd.f32 %v772_v56, %v771_v50  ;;  %v948_v56 = vpop.permute.xlu2 %947 }
 0x251   :  { %v748_v63 = vsel %vm114_vm1, %v728_v57, 0.0  ;;  %v755_v0 = vsel %vm114_vm1, %v729_v58, 0.0  ;;  %v950_v58 = vperm.slane %v948_v56, 0 }
 0x252   :  { %v767_v3 = vrot.slane %v766_v61, 1  ;;  %v774_v6 = vrot.slane %v773_v62, 1  ;;  %v749_v7 = vrot.slane %v748_v63, 4  ;;  %v756_v8 = vrot.slane %v755_v0, 4  ;;  %v645_v9 = vpop.f32.mrf.mxu2  ;;  %v658_v10 = vpop.f32.mrf.mxu3 }
 0x254   :  { %v750_v11 = vadd.f32 %v749_v7, %v748_v63  ;;  %v757_v12 = vadd.f32 %v756_v8, %v755_v0  ;;  %v768_v13 = vadd.f32 %v767_v3, %v766_v61  ;;  %v775_v15 = vadd.f32 %v774_v6, %v773_v62 }
 0x256   :  { %v751_v16 = vrot.slane %v750_v11, 2  ;;  %v758_v17 = vrot.slane %v757_v12, 2  ;;  %v812_v14 = vmul.f32 %v796_v1, %v768_v13  ;;  %v813_v18 = vmul.f32 %v797_v2, %v775_v15 }
 0x258   :  { %v752_v19 = vadd.f32 %v751_v16, %v750_v11  ;;  %v759_v20 = vadd.f32 %v758_v17, %v757_v12  ;;  %1047 = vmatmul.f32.vlgmr.msrb.gmra.mxu0 %v812_v14  ;;  %1067 = vmatmul.f32.vlgmr.msrb.gmra.mxu1 %v813_v18 }
 0x25a   :  { %v753_v21 = vrot.slane %v752_v19, 1  ;;  %v760_v22 = vrot.slane %v759_v20, 1 }
 0x25b   :  { %v695_v23 = vpop.f32.mrf.mxu2  ;;  %v708_v5 = vpop.f32.mrf.mxu3 }
 0x25c   :  { %v696_v28 = vadd.f32 %v695_v23, %v1443_v26  ;;  %v709_v29 = vadd.f32 %v708_v5, %v1443_v26  ;;  %v754_v30 = vadd.f32 %v753_v21, %v752_v19  ;;  %v761_v31 = vadd.f32 %v760_v22, %v759_v20 }
 0x25e   :  { %v718_v27 = vmax.f32 %v696_v28, 0.0  ;;  %v719_v32 = vmax.f32 %v709_v29, 0.0  ;;  %v810_v33 = vmul.f32 %v794_v24, %v754_v30  ;;  %v811_v34 = vmul.f32 %v795_v25, %v761_v31 }
 0x260   :  { %v732_v35 = vmul.f32 %v1447_v38, %v718_v27  ;;  %v733_v36 = vmul.f32 %v1447_v38, %v719_v32  ;;  %1007 = vmatmul.f32.vlgmr.msra.gmra.mxu2 %v810_v33  ;;  %1027 = vmatmul.f32.vlgmr.msra.gmra.mxu3 %v811_v34  ;;  %v798_v38 = vperm.slane %v1456_v4, 6 }
 0x262   :  { %v776_v37 = vsel %vm114_vm1, %v732_v35, 0.0  ;;  %v783_v39 = vsel %vm114_vm1, %v733_v36, 0.0 }
 0x263   :  { %v777_v40 = vrot.slane %v776_v37, 4  ;;  %v784_v41 = vrot.slane %v783_v39, 4  ;;  %v697_v42 = vpop.f32.mrf.mxu2  ;;  %v710_v26 = vpop.f32.mrf.mxu3 }
 0x265   :  { %v778_v43 = vadd.f32 %v777_v40, %v776_v37  ;;  %v785_v44 = vadd.f32 %v784_v41, %v783_v39 }
 0x267   :  { %v779_v45 = vrot.slane %v778_v43, 2  ;;  %v786_v46 = vrot.slane %v785_v44, 2 }
 0x269   :  { %v780_v47 = vadd.f32 %v779_v45, %v778_v43  ;;  %v787_v48 = vadd.f32 %v786_v46, %v785_v44 }
 0x26b   :  { %v781_v49 = vrot.slane %v780_v47, 1  ;;  %v788_v50 = vrot.slane %v787_v48, 1 }
 0x26d   :  { %v782_v52 = vadd.f32 %v781_v49, %v780_v47  ;;  %v789_v53 = vadd.f32 %v788_v50, %v787_v48 }
 0x26f   :  { %v814_v54 = vmul.f32 %v798_v38, %v782_v52  ;;  %v815_v55 = vmul.f32 %v799_v51, %v789_v53 }
 0x271   :  { %1087 = vmatmul.f32.vlgmr.msrb.gmra.mxu2 %v814_v54  ;;  %1107 = vmatmul.f32.vlgmr.msrb.gmra.mxu3 %v815_v55 }
 0x2c3   :  { %v968_v57 = vpop.f32.mrf.mxu0  ;;  %v988_v60 = vpop.f32.mrf.mxu1 }
 0x2c4   :  { %v969_v59 = vadd.f32 %v968_v57, %v950_v58 }
 0x2c6   :  { %v989_v62 = vadd.f32 %v988_v60, %v969_v59 }
 0x2d5   :  { %v1048_v2 = vpop.f32.mrf.mxu0  ;;  %v1068_v6 = vpop.f32.mrf.mxu1 }
 0x2e3   :  { %v1008_v61 = vpop.f32.mrf.mxu2  ;;  %v1028_v0 = vpop.f32.mrf.mxu3 }
 0x2e4   :  { %v1009_v63 = vadd.f32 %v1008_v61, %v989_v62 }
 0x2e6   :  { %v1029_v1 = vadd.f32 %v1028_v0, %v1009_v63 }
 0x2e8   :  { %v1049_v3 = vadd.f32 %v1048_v2, %v1029_v1 }
 0x2ea   :  { %v1069_v4 = vadd.f32 %v1068_v6, %v1049_v3 }
 0x2f4   :  { %v1088_v7 = vpop.f32.mrf.mxu2  ;;  %v1108_v9 = vpop.f32.mrf.mxu3 }
 0x2f5   :  { %v1089_v8 = vadd.f32 %v1088_v7, %v1069_v4 }
 0x2f7   :  { %v1109_v10 = vadd.f32 %v1108_v9, %v1089_v8 }
 0x2f9   :  { %1111 = vst [vmem:[#allocation8] sm:$0x1] %v1109_v10 }
 0x2fa   :  { %1122 = dma.vmem_to_hbm [thread:$0]  %s1118_s30, 16, %s1120_s16, [#allocation5]  }
 0x2fb   :  { %1248 = dma.done.wait [#allocation5], 16  }
 0x2fc   :  { %1249 = vsyncadd [#allocation5], 4294967280 }
 0x2fd   :  { %1127 = vsyncpa [#allocation4], 1 }
 0x2fe   :  { %1128 = vsyncpa [#allocation7], 1 }
 0x2ff   :  { %1129 = vsyncpa [#allocation5], 1 }

</bundles_post_ra>
